<compile_context>
chip_gen: v6e
topology: v6e:2x2x1
jax: 0.10.0
libtpu: 0.0.40
codegen_flags: <defaults>
</compile_context>

<pallas_src>
import functools
from typing import NamedTuple

import jax
import jax.numpy as jnp
from jax import lax
from jax.experimental import pallas as pl
from jax.experimental.pallas import tpu as pltpu


_TARGET_TILE_BYTES = 4 << 20        # ~4 MiB of feat per grid step (mem-bound sweet spot)
_VMEM_WORKING_SET_CAP = 36 << 20    # keep working set well under v7x's 64 MiB VMEM
_VMEM_LIMIT_CAP = 40 << 20          # never request more scoped VMEM than this
_BUFFERED_OK = [True]               # falls back if pl.Buffered(1) is unsupported


def _round_up(x: int, m: int) -> int:
    return ((x + m - 1) // m) * m


class PreparedMLP(NamedTuple):
    params: tuple          # (w0, b0, w1, b1, ..., wL, bL) in kernel layout
    lane_dense_out: bool   # final layer emitted as (out_dim, TB)
    dims: tuple            # (input_dim, h1, ..., out_dim)


# ----------------------------------------------------------------------------
# Kernel
# ----------------------------------------------------------------------------
def _make_mlp_kernel(num_layers: int, lane_dense_out: bool):
    """Fused MLP kernel. refs = (x, w0, b0, w1, b1, ..., wL, bL, out)."""

    def kernel(*refs):
        x_ref = refs[0]
        out_ref = refs[-1]
        param_dtype = refs[1].dtype
        h = x_ref[...]                                    # (TB, in_dim)
        for layer in range(num_layers):
            w = refs[1 + 2 * layer][...]
            b = refs[2 + 2 * layer][...]
            last = layer == num_layers - 1
            if last and lane_dense_out:
                # w kept in torch layout (out_dim, H); contract the last dims of
                # both operands -> lane-dense (out_dim, TB) result (unmasked vst).
                # NOTE(review #8): the implicit h^T goes through the XLU; if TB
                # is made very large, check the Mosaic dump for a VMEM copy.
                out = lax.dot_general(
                    w, h, (((1,), (1,)), ((), ())),
                    preferred_element_type=jnp.float32) + b
                out_ref[...] = out.astype(out_ref.dtype)
            else:
                # w pre-transposed to (in, out) -> lane-dense x @ w on the MXU.
                h = jnp.dot(h, w, preferred_element_type=jnp.float32) + b
                if last:
                    out_ref[...] = h.astype(out_ref.dtype)
                else:
                    # ReLU, then back to the (possibly bf16) MXU input dtype.
                    h = jnp.maximum(h, 0.0).astype(param_dtype)

    return kernel


# ----------------------------------------------------------------------------
# Parameter preparation (one-time, outside the hot path)
# ----------------------------------------------------------------------------
def prepare_mlp_params(params, param_dtype=jnp.bfloat16):
    """Preprocess torch-layout params (w: (out,in), b: (out,)).

    Hidden weights are transposed to (in, out); if the final layer has
    out_dim < 128 it is kept as an (out_dim, in) slab so the kernel can emit a
    lane-dense (out_dim, TB) output tile.  Weights are cast to `param_dtype`
    (bf16 by default -- accuracy-reviewed change; pass jnp.float32 to keep full
    precision).  Biases stay f32 (negligible bytes, added to the f32 acc).
    """
    weights = [jnp.asarray(w) for w in params[0::2]]
    biases = [jnp.asarray(b) for b in params[1::2]]
    out_dim = int(weights[-1].shape[0])
    lane_dense_out = out_dim < 128
    dims = tuple(int(w.shape[1]) for w in weights) + (out_dim,)

    n = len(weights)
    prepped = []
    for i, (w, b) in enumerate(zip(weights, biases)):
        w = w.astype(param_dtype)
        b = b.astype(jnp.float32)
        if i == n - 1 and lane_dense_out:
            prepped.append(w)                       # (out_dim, in)
            prepped.append(b.reshape(-1, 1))        # (out_dim, 1)
        else:
            prepped.append(jnp.transpose(w))        # (in, out)
            prepped.append(b.reshape(1, -1))        # (1, out)
    return PreparedMLP(params=tuple(prepped), lane_dense_out=lane_dense_out,
                       dims=dims)


# ----------------------------------------------------------------------------
# Tile / VMEM sizing
# ----------------------------------------------------------------------------
def _estimate_vmem_need(tb, dims, stream_itemsize, param_bytes):
    input_dim, out_dim = dims[0], dims[-1]
    feat_tiles = 2 * tb * input_dim * stream_itemsize      # double-buffered stream
    out_tiles = 2 * tb * out_dim * 4                       # double-buffered f32 out
    act = 2 * tb * max(dims) * 4                           # f32 intermediates
    return feat_tiles + out_tiles + 2 * param_bytes + act  # params counted 2x (safe)


def _choose_batch_tile(batch, dims, stream_itemsize, param_bytes, batch_tile=None):
    """Byte-sized, lane-aligned batch tile; guarantees >=2 tiles when possible."""
    input_dim = dims[0]
    padded8 = _round_up(batch, 8)

    # Small batch: a single tile covering the whole (sublane-padded) array.
    if batch_tile is None and padded8 < 256:
        return padded8, padded8

    if batch_tile is None:
        tb = _TARGET_TILE_BYTES // max(1, input_dim * stream_itemsize)
    else:
        tb = int(batch_tile)
    tb = max(128, (tb // 128) * 128)              # lane-aligned (multiple of 128)

    padded128 = _round_up(batch, 128)
    # v7x megacore: make sure there are >= 2 grid steps when the batch allows it.
    if tb >= padded128 and padded128 >= 256:
        tb = max(128, (padded128 // 2 // 128) * 128)
    tb = min(tb, padded128)

    # Shrink until the VMEM working set fits the cap (safe on v7x's 64 MiB).
    while tb > 128 and _estimate_vmem_need(tb, dims, stream_itemsize,
                                           param_bytes) > _VMEM_WORKING_SET_CAP:
        tb = max(128, (tb // 2 // 128) * 128)

    padded_batch = _round_up(batch, tb)
    return tb, padded_batch


# ----------------------------------------------------------------------------
# pallas_call wrapper
# ----------------------------------------------------------------------------
@functools.partial(jax.jit,
                   static_argnames=("dims", "lane_dense_out", "tb", "use_buffered"))
def _mlp_pallas(feat, params, *, dims, lane_dense_out, tb, use_buffered):
    padded_batch, input_dim = feat.shape
    num_layers = len(dims) - 1
    out_dim = dims[-1]
    num_tiles = padded_batch // tb

    # feat streamed per batch tile; params resident (constant index_map).
    in_specs = [pl.BlockSpec((tb, input_dim), lambda i: (i, 0))]
    for p in params:
        if use_buffered:
            # Single-buffer resident params: double-buffering a constant block
            # only doubles its VMEM footprint.
            in_specs.append(pl.BlockSpec(p.shape, lambda i: (0, 0),
                                         pipeline_mode=pl.Buffered(1)))
        else:
            in_specs.append(pl.BlockSpec(p.shape, lambda i: (0, 0)))

    if lane_dense_out:
        out_shape = jax.ShapeDtypeStruct((out_dim, padded_batch), jnp.float32)
        out_spec = pl.BlockSpec((out_dim, tb), lambda i: (0, i))
    else:
        out_shape = jax.ShapeDtypeStruct((padded_batch, out_dim), jnp.float32)
        out_spec = pl.BlockSpec((tb, out_dim), lambda i: (i, 0))

    # VMEM limit derived from the actual working set (never a hardcoded 48 MiB).
    param_bytes = sum(int(p.size) * p.dtype.itemsize for p in params)
    stream_itemsize = feat.dtype.itemsize
    need = _estimate_vmem_need(tb, dims, stream_itemsize, param_bytes)
    vmem_limit = int(min(_VMEM_LIMIT_CAP, max(2 * need + (4 << 20), 16 << 20)))

    # Advisory cost estimate for XLA scheduling.
    flops = 2 * padded_batch * sum(dims[i] * dims[i + 1] for i in range(num_layers))
    bytes_accessed = (int(feat.size) * stream_itemsize
                      + padded_batch * out_dim * 4 + param_bytes)
    cost = pl.CostEstimate(flops=flops, transcendentals=0,
                           bytes_accessed=bytes_accessed)

    return pl.pallas_call(
        _make_mlp_kernel(num_layers, lane_dense_out),
        out_shape=out_shape,
        grid_spec=pltpu.PrefetchScalarGridSpec(
            num_scalar_prefetch=0,
            grid=(num_tiles,),
            in_specs=in_specs,
            out_specs=out_spec,
        ),
        compiler_params=pltpu.CompilerParams(
            dimension_semantics=("parallel",),   # shard batch tiles over v7x's 2 TCs
            vmem_limit_bytes=vmem_limit,
        ),
        cost_estimate=cost,
    )(feat, *params)


def mlp_forward(feat, prepped: PreparedMLP, batch_tile=None):
    """Forward pass: score = MLP(feat).squeeze(-1).  feat: (batch, input_dim)."""
    params = prepped.params
    lane_dense_out = prepped.lane_dense_out
    dims = prepped.dims
    out_dim = dims[-1]

    batch, input_dim = feat.shape
    assert input_dim == dims[0], (input_dim, dims)
    orig_dtype = feat.dtype

    # Stream feat in the weight dtype (bf16 stream when params are bf16).
    stream_dtype = params[0].dtype
    feat = feat.astype(stream_dtype)
    stream_itemsize = jnp.dtype(stream_dtype).itemsize
    param_bytes = sum(int(p.size) * p.dtype.itemsize for p in params)

    tb, padded_batch = _choose_batch_tile(batch, dims, stream_itemsize,
                                          param_bytes, batch_tile)
    if padded_batch != batch:
        feat = jnp.pad(feat, ((0, padded_batch - batch), (0, 0)))

    kwargs = dict(dims=dims, lane_dense_out=lane_dense_out, tb=tb)
    if _BUFFERED_OK[0]:
        try:
            out = _mlp_pallas(feat, params, use_buffered=True, **kwargs)
        except Exception:
            _BUFFERED_OK[0] = False
            out = _mlp_pallas(feat, params, use_buffered=False, **kwargs)
    else:
        out = _mlp_pallas(feat, params, use_buffered=False, **kwargs)

    if lane_dense_out:
        out = out[:, :batch]                              # (out_dim, batch)
        out = out.reshape(batch) if out_dim == 1 else out.T
    else:
        out = out[:batch]
        if out_dim == 1:
            out = out.reshape(batch)                      # torch .squeeze(-1)
    return out.astype(orig_dtype)


# ----------------------------------------------------------------------------
# Init & reference
# ----------------------------------------------------------------------------
def init_mlp_params(key, input_dim, hidden_layers, output_dim=1):
    """torch.nn.Linear-style init: U(-k, k), k = 1/sqrt(fan_in); torch layout."""
    params = []
    dims = [input_dim] + list(hidden_layers) + [output_dim]
    for i in range(len(dims) - 1):
        fan_in, fan_out = dims[i], dims[i + 1]
        k = 1.0 / jnp.sqrt(jnp.float32(fan_in))
        key, kw, kb = jax.random.split(key, 3)
        w = jax.random.uniform(kw, (fan_out, fan_in), jnp.float32, -k, k)
        b = jax.random.uniform(kb, (fan_out,), jnp.float32, -k, k)
        params.extend([w, b])
    return params


def _reference_forward(feat, *params):
    """Pure-JAX reference (torch-layout params), f32."""
    weights = params[0::2]
    biases = params[1::2]
    h = feat
    for i, (w, b) in enumerate(zip(weights, biases)):
        h = h @ w.T + b
        if i < len(weights) - 1:
            h = jnp.maximum(h, 0.0)
    return h.squeeze(-1)


if __name__ == "__main__":
    key = jax.random.PRNGKey(0)
    batch, input_dim = 8, 32
    hidden_layers = [64, 32]
    output_dim = 1

    key, kfeat, kparams = jax.random.split(key, 3)
    feat = jax.random.normal(kfeat, (batch, input_dim), jnp.float32)
    params = init_mlp_params(kparams, input_dim, hidden_layers, output_dim)

    # ---- f32 params: tight correctness check (single small tile) ----
    prepped_f32 = prepare_mlp_params(params, param_dtype=jnp.float32)
    score = mlp_forward(feat, prepped_f32)
    jax.block_until_ready(score)
    ref = _reference_forward(feat, *params)
    assert score.shape == (batch,), score.shape
    assert jnp.allclose(score, ref, atol=1e-4, rtol=1e-4), "mismatch vs reference"

    # ---- multi-tile + padding path: batch=300, TB=128 -> 3 grid steps ----
    feat2 = jax.random.normal(jax.random.PRNGKey(1), (300, input_dim), jnp.float32)
    score2 = mlp_forward(feat2, prepped_f32, batch_tile=128)
    jax.block_until_ready(score2)
    ref2 = _reference_forward(feat2, *params)
    assert score2.shape == (300,), score2.shape
    assert jnp.allclose(score2, ref2, atol=1e-4, rtol=1e-4), "mismatch (tiled)"

    # ---- bf16 weight/feat stream (accuracy-reviewed perf mode), auto tiling ----
    prepped_bf16 = prepare_mlp_params(params, param_dtype=jnp.bfloat16)
    feat3 = jax.random.normal(jax.random.PRNGKey(2), (2048, input_dim), jnp.float32)
    score3 = mlp_forward(feat3, prepped_bf16)       # auto: TB=1024 -> 2 tiles
    jax.block_until_ready(score3)
    ref3 = _reference_forward(feat3, *params)
    assert score3.shape == (2048,), score3.shape
    assert jnp.allclose(score3, ref3, atol=5e-2, rtol=5e-2), "mismatch (bf16 stream)"

    print("KERNEL_OK")
</pallas_src>

<mosaic_0001>
module attributes {stable_mosaic.version = 11 : i64} {
  func.func @kernel(%arg0: i32, %arg1: memref<8x32xf32, #tpu.memory_space<vmem>>, %arg2: memref<32x64xf32, #tpu.memory_space<vmem>>, %arg3: memref<1x64xf32, #tpu.memory_space<vmem>>, %arg4: memref<64x32xf32, #tpu.memory_space<vmem>>, %arg5: memref<1x32xf32, #tpu.memory_space<vmem>>, %arg6: memref<1x32xf32, #tpu.memory_space<vmem>>, %arg7: memref<1x1xf32, #tpu.memory_space<vmem>>, %arg8: memref<1x8xf32, #tpu.memory_space<vmem>>) attributes {dimension_semantics = [#tpu.dimension_semantics<parallel>], iteration_bounds = array<i64: 1>, scalar_prefetch = 0 : i64, scratch_operands = 0 : i64, tpu.core_type = #tpu.core_type<tc>, window_params = [{transform_indices = @transform_0, window_bounds = array<i64: 8, 32>}, {pipeline_mode = #tpu.pipeline_mode<synchronous>, transform_indices = @transform_1, window_bounds = array<i64: 32, 64>}, {pipeline_mode = #tpu.pipeline_mode<synchronous>, transform_indices = @transform_2, window_bounds = array<i64: 1, 64>}, {pipeline_mode = #tpu.pipeline_mode<synchronous>, transform_indices = @transform_3, window_bounds = array<i64: 64, 32>}, {pipeline_mode = #tpu.pipeline_mode<synchronous>, transform_indices = @transform_4, window_bounds = array<i64: 1, 32>}, {pipeline_mode = #tpu.pipeline_mode<synchronous>, transform_indices = @transform_5, window_bounds = array<i64: 1, 32>}, {pipeline_mode = #tpu.pipeline_mode<synchronous>, transform_indices = @transform_6, window_bounds = array<i64: 1, 1>}, {transform_indices = @transform_7, window_bounds = array<i64: 1, 8>}]} {
    %c0 = arith.constant 0 : index
    %c0_0 = arith.constant 0 : index
    %0 = vector.load %arg1[%c0, %c0_0] : memref<8x32xf32, #tpu.memory_space<vmem>>, vector<8x32xf32>
    %c0_1 = arith.constant 0 : index
    %c0_2 = arith.constant 0 : index
    %1 = vector.load %arg2[%c0_1, %c0_2] : memref<32x64xf32, #tpu.memory_space<vmem>>, vector<32x64xf32>
    %c0_3 = arith.constant 0 : index
    %c0_4 = arith.constant 0 : index
    %2 = vector.load %arg3[%c0_3, %c0_4] : memref<1x64xf32, #tpu.memory_space<vmem>>, vector<1x64xf32>
    %cst = arith.constant dense<0.000000e+00> : vector<8x64xf32>
    %3 = tpu.matmul %0, %1, %cst {dimension_numbers = #tpu.dot_dimension_numbers<[1], [0], [0], [1], [0, 0, 1, 1], [], []>} : vector<8x32xf32>, vector<32x64xf32>, vector<8x64xf32> -> vector<8x64xf32>
    %4 = vector.broadcast %2 : vector<1x64xf32> to vector<8x64xf32>
    %5 = arith.addf %3, %4 : vector<8x64xf32>
    %cst_5 = arith.constant 0.000000e+00 : f32
    %6 = vector.broadcast %cst_5 : f32 to vector<8x64xf32>
    %7 = arith.maximumf %5, %6 : vector<8x64xf32>
    %c0_6 = arith.constant 0 : index
    %c0_7 = arith.constant 0 : index
    %8 = vector.load %arg4[%c0_6, %c0_7] : memref<64x32xf32, #tpu.memory_space<vmem>>, vector<64x32xf32>
    %c0_8 = arith.constant 0 : index
    %c0_9 = arith.constant 0 : index
    %9 = vector.load %arg5[%c0_8, %c0_9] : memref<1x32xf32, #tpu.memory_space<vmem>>, vector<1x32xf32>
    %cst_10 = arith.constant dense<0.000000e+00> : vector<8x32xf32>
    %10 = tpu.matmul %7, %8, %cst_10 {dimension_numbers = #tpu.dot_dimension_numbers<[1], [0], [0], [1], [0, 0, 1, 1], [], []>} : vector<8x64xf32>, vector<64x32xf32>, vector<8x32xf32> -> vector<8x32xf32>
    %11 = vector.broadcast %9 : vector<1x32xf32> to vector<8x32xf32>
    %12 = arith.addf %10, %11 : vector<8x32xf32>
    %cst_11 = arith.constant 0.000000e+00 : f32
    %13 = vector.broadcast %cst_11 : f32 to vector<8x32xf32>
    %14 = arith.maximumf %12, %13 : vector<8x32xf32>
    %c0_12 = arith.constant 0 : index
    %c0_13 = arith.constant 0 : index
    %15 = vector.load %arg6[%c0_12, %c0_13] : memref<1x32xf32, #tpu.memory_space<vmem>>, vector<1x32xf32>
    %c0_14 = arith.constant 0 : index
    %c0_15 = arith.constant 0 : index
    %16 = vector.load %arg7[%c0_14, %c0_15] : memref<1x1xf32, #tpu.memory_space<vmem>>, vector<1x1xf32>
    %cst_16 = arith.constant dense<0.000000e+00> : vector<1x8xf32>
    %17 = tpu.matmul %15, %14, %cst_16 {dimension_numbers = #tpu.dot_dimension_numbers<[1], [1], [0], [0], [0, 0, 1, 0], [], []>} : vector<1x32xf32>, vector<8x32xf32>, vector<1x8xf32> -> vector<1x8xf32>
    %18 = vector.broadcast %16 : vector<1x1xf32> to vector<1x8xf32>
    %19 = arith.addf %17, %18 : vector<1x8xf32>
    %c0_17 = arith.constant 0 : index
    %c0_18 = arith.constant 0 : index
    %20 = vector.load %arg8[%c0_17, %c0_18] : memref<1x8xf32, #tpu.memory_space<vmem>>, vector<1x8xf32>
    tpu.vector_store %arg8[%c0_17, %c0_18], %19 {strides = array<i32>} : memref<1x8xf32, #tpu.memory_space<vmem>>, vector<1x8xf32>,
    return
  }
  func.func @transform_0(%arg0: i32) -> (i32, i32) {
    %c0_i32 = arith.constant 0 : i32
    %c0_i32_0 = arith.constant 0 : i32
    return %arg0, %c0_i32 : i32, i32
  }
  func.func @transform_1(%arg0: i32) -> (i32, i32) {
    %c0_i32 = arith.constant 0 : i32
    %c0_i32_0 = arith.constant 0 : i32
    %c0_i32_1 = arith.constant 0 : i32
    return %c0_i32, %c0_i32_0 : i32, i32
  }
  func.func @transform_2(%arg0: i32) -> (i32, i32) {
    %c0_i32 = arith.constant 0 : i32
    %c0_i32_0 = arith.constant 0 : i32
    %c0_i32_1 = arith.constant 0 : i32
    return %c0_i32, %c0_i32_0 : i32, i32
  }
  func.func @transform_3(%arg0: i32) -> (i32, i32) {
    %c0_i32 = arith.constant 0 : i32
    %c0_i32_0 = arith.constant 0 : i32
    %c0_i32_1 = arith.constant 0 : i32
    return %c0_i32, %c0_i32_0 : i32, i32
  }
  func.func @transform_4(%arg0: i32) -> (i32, i32) {
    %c0_i32 = arith.constant 0 : i32
    %c0_i32_0 = arith.constant 0 : i32
    %c0_i32_1 = arith.constant 0 : i32
    return %c0_i32, %c0_i32_0 : i32, i32
  }
  func.func @transform_5(%arg0: i32) -> (i32, i32) {
    %c0_i32 = arith.constant 0 : i32
    %c0_i32_0 = arith.constant 0 : i32
    %c0_i32_1 = arith.constant 0 : i32
    return %c0_i32, %c0_i32_0 : i32, i32
  }
  func.func @transform_6(%arg0: i32) -> (i32, i32) {
    %c0_i32 = arith.constant 0 : i32
    %c0_i32_0 = arith.constant 0 : i32
    %c0_i32_1 = arith.constant 0 : i32
    return %c0_i32, %c0_i32_0 : i32, i32
  }
  func.func @transform_7(%arg0: i32) -> (i32, i32) {
    %c0_i32 = arith.constant 0 : i32
    %c0_i32_0 = arith.constant 0 : i32
    return %c0_i32, %arg0 : i32, i32
  }
}

module attributes {stable_mosaic.version = 11 : i64} {
  func.func @kernel(%arg0: i32, %arg1: memref<8x32xf32, #tpu.memory_space<vmem>>, %arg2: memref<32x64xf32, #tpu.memory_space<vmem>>, %arg3: memref<1x64xf32, #tpu.memory_space<vmem>>, %arg4: memref<64x32xf32, #tpu.memory_space<vmem>>, %arg5: memref<1x32xf32, #tpu.memory_space<vmem>>, %arg6: memref<1x32xf32, #tpu.memory_space<vmem>>, %arg7: memref<1x1xf32, #tpu.memory_space<vmem>>, %arg8: memref<1x8xf32, #tpu.memory_space<vmem>>) attributes {dimension_semantics = [#tpu.dimension_semantics<parallel>], iteration_bounds = array<i64: 1>, scalar_prefetch = 0 : i64, scratch_operands = 0 : i64, tpu.core_type = #tpu.core_type<tc>, window_params = [{transform_indices = @transform_0, window_bounds = array<i64: 8, 32>}, {pipeline_mode = #tpu.pipeline_mode<synchronous>, transform_indices = @transform_1, window_bounds = array<i64: 32, 64>}, {pipeline_mode = #tpu.pipeline_mode<synchronous>, transform_indices = @transform_2, window_bounds = array<i64: 1, 64>}, {pipeline_mode = #tpu.pipeline_mode<synchronous>, transform_indices = @transform_3, window_bounds = array<i64: 64, 32>}, {pipeline_mode = #tpu.pipeline_mode<synchronous>, transform_indices = @transform_4, window_bounds = array<i64: 1, 32>}, {pipeline_mode = #tpu.pipeline_mode<synchronous>, transform_indices = @transform_5, window_bounds = array<i64: 1, 32>}, {pipeline_mode = #tpu.pipeline_mode<synchronous>, transform_indices = @transform_6, window_bounds = array<i64: 1, 1>}, {transform_indices = @transform_7, window_bounds = array<i64: 1, 8>}]} {
    %c0 = arith.constant 0 : index
    %c0_0 = arith.constant 0 : index
    %0 = vector.load %arg1[%c0, %c0_0] : memref<8x32xf32, #tpu.memory_space<vmem>>, vector<8x32xf32>
    %c0_1 = arith.constant 0 : index
    %c0_2 = arith.constant 0 : index
    %1 = vector.load %arg2[%c0_1, %c0_2] : memref<32x64xf32, #tpu.memory_space<vmem>>, vector<32x64xf32>
    %c0_3 = arith.constant 0 : index
    %c0_4 = arith.constant 0 : index
    %2 = vector.load %arg3[%c0_3, %c0_4] : memref<1x64xf32, #tpu.memory_space<vmem>>, vector<1x64xf32>
    %cst = arith.constant dense<0.000000e+00> : vector<8x64xf32>
    %3 = tpu.matmul %0, %1, %cst {dimension_numbers = #tpu.dot_dimension_numbers<[1], [0], [0], [1], [0, 0, 1, 1], [], []>} : vector<8x32xf32>, vector<32x64xf32>, vector<8x64xf32> -> vector<8x64xf32>
    %4 = vector.broadcast %2 : vector<1x64xf32> to vector<8x64xf32>
    %5 = arith.addf %3, %4 : vector<8x64xf32>
    %cst_5 = arith.constant 0.000000e+00 : f32
    %6 = vector.broadcast %cst_5 : f32 to vector<8x64xf32>
    %7 = arith.maximumf %5, %6 : vector<8x64xf32>
    %c0_6 = arith.constant 0 : index
    %c0_7 = arith.constant 0 : index
    %8 = vector.load %arg4[%c0_6, %c0_7] : memref<64x32xf32, #tpu.memory_space<vmem>>, vector<64x32xf32>
    %c0_8 = arith.constant 0 : index
    %c0_9 = arith.constant 0 : index
    %9 = vector.load %arg5[%c0_8, %c0_9] : memref<1x32xf32, #tpu.memory_space<vmem>>, vector<1x32xf32>
    %cst_10 = arith.constant dense<0.000000e+00> : vector<8x32xf32>
    %10 = tpu.matmul %7, %8, %cst_10 {dimension_numbers = #tpu.dot_dimension_numbers<[1], [0], [0], [1], [0, 0, 1, 1], [], []>} : vector<8x64xf32>, vector<64x32xf32>, vector<8x32xf32> -> vector<8x32xf32>
    %11 = vector.broadcast %9 : vector<1x32xf32> to vector<8x32xf32>
    %12 = arith.addf %10, %11 : vector<8x32xf32>
    %cst_11 = arith.constant 0.000000e+00 : f32
    %13 = vector.broadcast %cst_11 : f32 to vector<8x32xf32>
    %14 = arith.maximumf %12, %13 : vector<8x32xf32>
    %c0_12 = arith.constant 0 : index
    %c0_13 = arith.constant 0 : index
    %15 = vector.load %arg6[%c0_12, %c0_13] : memref<1x32xf32, #tpu.memory_space<vmem>>, vector<1x32xf32>
    %c0_14 = arith.constant 0 : index
    %c0_15 = arith.constant 0 : index
    %16 = vector.load %arg7[%c0_14, %c0_15] : memref<1x1xf32, #tpu.memory_space<vmem>>, vector<1x1xf32>
    %cst_16 = arith.constant dense<0.000000e+00> : vector<1x8xf32>
    %17 = tpu.matmul %15, %14, %cst_16 {dimension_numbers = #tpu.dot_dimension_numbers<[1], [1], [0], [0], [0, 0, 1, 0], [], []>} : vector<1x32xf32>, vector<8x32xf32>, vector<1x8xf32> -> vector<1x8xf32>
    %18 = vector.broadcast %16 : vector<1x1xf32> to vector<1x8xf32>
    %19 = arith.addf %17, %18 : vector<1x8xf32>
    %c0_17 = arith.constant 0 : index
    %c0_18 = arith.constant 0 : index
    %20 = vector.load %arg8[%c0_17, %c0_18] : memref<1x8xf32, #tpu.memory_space<vmem>>, vector<1x8xf32>
    tpu.vector_store %arg8[%c0_17, %c0_18], %19 {strides = array<i32>} : memref<1x8xf32, #tpu.memory_space<vmem>>, vector<1x8xf32>,
    return
  }
  func.func @transform_0(%arg0: i32) -> (i32, i32) {
    %c0_i32 = arith.constant 0 : i32
    %c0_i32_0 = arith.constant 0 : i32
    return %arg0, %c0_i32 : i32, i32
  }
  func.func @transform_1(%arg0: i32) -> (i32, i32) {
    %c0_i32 = arith.constant 0 : i32
    %c0_i32_0 = arith.constant 0 : i32
    %c0_i32_1 = arith.constant 0 : i32
    return %c0_i32, %c0_i32_0 : i32, i32
  }
  func.func @transform_2(%arg0: i32) -> (i32, i32) {
    %c0_i32 = arith.constant 0 : i32
    %c0_i32_0 = arith.constant 0 : i32
    %c0_i32_1 = arith.constant 0 : i32
    return %c0_i32, %c0_i32_0 : i32, i32
  }
  func.func @transform_3(%arg0: i32) -> (i32, i32) {
    %c0_i32 = arith.constant 0 : i32
    %c0_i32_0 = arith.constant 0 : i32
    %c0_i32_1 = arith.constant 0 : i32
    return %c0_i32, %c0_i32_0 : i32, i32
  }
  func.func @transform_4(%arg0: i32) -> (i32, i32) {
    %c0_i32 = arith.constant 0 : i32
    %c0_i32_0 = arith.constant 0 : i32
    %c0_i32_1 = arith.constant 0 : i32
    return %c0_i32, %c0_i32_0 : i32, i32
  }
  func.func @transform_5(%arg0: i32) -> (i32, i32) {
    %c0_i32 = arith.constant 0 : i32
    %c0_i32_0 = arith.constant 0 : i32
    %c0_i32_1 = arith.constant 0 : i32
    return %c0_i32, %c0_i32_0 : i32, i32
  }
  func.func @transform_6(%arg0: i32) -> (i32, i32) {
    %c0_i32 = arith.constant 0 : i32
    %c0_i32_0 = arith.constant 0 : i32
    %c0_i32_1 = arith.constant 0 : i32
    return %c0_i32, %c0_i32_0 : i32, i32
  }
  func.func @transform_7(%arg0: i32) -> (i32, i32) {
    %c0_i32 = arith.constant 0 : i32
    %c0_i32_0 = arith.constant 0 : i32
    return %c0_i32, %arg0 : i32, i32
  }
}

</mosaic_0001>

<bundles_post_ra>
// kernel: _mlp_pallas.1
= control target key start
LH: loop header
LB: loop body
LE: loop exit
PB: predicated region body
PF: predicated region fallthrough
CT: control target
= control target key end

     0   :  { %s497_s0 = inlined_call_operand.vmem [shape: f32[8,32], index: 0, kind: input, shape index: {}]   ;;  %s498_s1 = inlined_call_operand.vmem [shape: f32[32,64], index: 1, kind: input, shape index: {}]   ;;  %s499_s2 = inlined_call_operand.vmem [shape: f32[1,64], index: 2, kind: input, shape index: {}]   ;;  %s500_s3 = inlined_call_operand.vmem [shape: f32[64,32], index: 3, kind: input, shape index: {}]   ;;  %s501_s4 = inlined_call_operand.vmem [shape: f32[1,32], index: 4, kind: input, shape index: {}]   ;;  %s502_s5 = inlined_call_operand.vmem [shape: f32[1,32], index: 5, kind: input, shape index: {}]   ;;  %s503_s6 = inlined_call_operand.<no memory space> [shape: f32[1,1], index: 6, kind: input, shape index: {}]   ;;  %s504_s7 = inlined_call_operand.hbm [shape: f32[1,8], index: 7, kind: output, shape index: {}]  }
   0x1   :  { %v12_v0 = vstv %s503_s6 }
   0x2   :  { %13 = vst [vmem:[#allocation2] sm:$0x1] %v12_v0 }
   0x3   :  { %v33_v1 = vld [vmem:[%s498_s1 + $0x18] sm:$0xff]  ;;  %v393_v2 = vmov 0.0   ;;  %v32_v3 = vld [vmem:[%s498_s1 + $0x10] sm:$0xff]  ;;  %vm394_vm0 = vmmov 0   ;;  %v31_v6 = vld [vmem:[%s498_s1 + $0x8] sm:$0xff] }
   0x4   :  { %331 = vmatprep.subr.mxu0 %v393_v2  ;;  %339 = vmatprep.mubr.msk.f32.mxu0 %vm394_vm0, %v393_v2  ;;  %v123_v4 = vld [vmem:[%s500_s3 + $0x38] sm:$0xff]  ;;  %v122_v5 = vld [vmem:[%s500_s3 + $0x30] sm:$0xff] }
   0x5   :  { %332 = vmatpush3.msra.mxu0 %v33_v1  ;;  %342 = vmatprep.subr.mxu1 %v393_v2 }
   0x6   :  { %333 = vmatprep.subr.mxu0 %v393_v2  ;;  %343 = vmatpush3.msra.mxu1 %v123_v4 }
   0x7   :  { %14 = vsyncpa [#allocation4], 0  ;;  %334 = vmatpush3.msra.mxu0 %v32_v3  ;;  %344 = vmatprep.subr.mxu1 %v393_v2  ;;  %v121_v7 = vld [vmem:[%s500_s3 + $0x28] sm:$0xff]  ;;  %v30_v8 = vld [vmem:[%s498_s1] sm:$0xff]  ;;  %vm41_vm1 = vcmask 261120   ;;  %vm131_vm2 = vcmask 523264   ;;  %v213_v28 = vlaneseq }
   0x8   :  { %335 = vmatprep.subr.mxu0 %v393_v2  ;;  %345 = vmatpush3.msra.mxu1 %v122_v5  ;;  %v29_v9 = vld [vmem:[%s497_s0] sm:$0xff]  ;;  %v119_v11 = vld [vmem:[%s500_s3 + $0x18] sm:$0xff]  ;;  %v118_v12 = vld [vmem:[%s500_s3 + $0x10] sm:$0xff]  ;;  %v395_v21 = vmov 0   ;;  %s396_s30 = smov [#allocation3]   ;;  %vm293_vm3 = vcmask 57344  }
   0x9   :  { %336 = vmatpush3.msra.mxu0 %v31_v6  ;;  %346 = vmatprep.subr.mxu1 %v393_v2  ;;  %v120_v10 = vld [vmem:[%s500_s3 + $0x20] sm:$0xff]  ;;  %v117_v13 = vld [vmem:[%s500_s3 + $0x8] sm:$0xff]  ;;  %v214_v29 = vshrl.u32 %v213_v28, 7  ;;  %s301_s8 = sshll.u32 %s396_s30, 4  ;;  %s302_s8 = int_to_ptr.vmem [resolvable:$true] %s301_s8 }
   0xa   :  { %337 = vmatprep.subr.mxu0 %v393_v2  ;;  %347 = vmatpush3.msra.mxu1 %v121_v7  ;;  %v116_v14 = vld [vmem:[%s500_s3] sm:$0xff]  ;;  %s375_s6 = scalar_lea.vmem %s302_s8, 32  ;;  %p376_p1 = scmp.lt.s32.totalorder %s302_s8, %s302_s8 }
   0xb   :  { %338 = vmatpush3.msra.mxu0 %v30_v8  ;;  %348 = vmatprep.subr.mxu1 %v393_v2  ;;  %v309_v15 = vld [vmem:[%s499_s2] ss:$0 sm:$0xff]  ;;  %v215_v30 = vsub.s32 0, %v214_v29 }
   0xc   :  { %340 = vmatmul.mubr.msk.f32.vlgmr.msra.gmra.mxu0 %vm41_vm1, %v29_v9  ;;  %349 = vmatpush3.msra.mxu1 %v120_v10  ;;  %v207_v20 = vld [vmem:[#allocation2] sm:$0x1] }
   0xd   :  { %350 = vmatprep.subr.mxu1 %v393_v2  ;;  %358 = vmatprep.mubr.msk.f32.mxu1 %vm394_vm0, %v393_v2  ;;  %v311_v22 = vld [vmem:[%s501_s4] ss:$0 sm:$0xff]  ;;  %s371_s4 = scalar_lea.vmem %s302_s8, 16 }
   0xe   :  { %351 = vmatpush3.msra.mxu1 %v119_v11  ;;  %361 = vmatprep.subr.mxu0 %v393_v2  ;;  %v206_v27 = vld [vmem:[%s502_s5] sm:$0x1]  ;;  %p372_p0 = scmp.ne.s32.totalorder %s302_s8, %s371_s4  ;;  %p377_p2 = scmp.lt.s32.totalorder %s375_s6, %s371_s4 }
   0xf   :  { %352 = vmatprep.subr.mxu1 %v393_v2  ;;  %363 = vmatprep.mubr.msk.f32.mxu0 %vm394_vm0, %v393_v2 }
  0x10   :  { %353 = vmatpush3.msra.mxu1 %v118_v12  ;;  %370 = vset.pattern.permute.xlu0 %v395_v21  ;;  %p378_p3 = por %p377_p2, %p376_p1 }
  0x11   :  { %354 = vmatprep.subr.mxu1 %v393_v2  ;;  %210 = vperm.xlu0 %370, %v207_v20  }
  0x12   :  { %355 = vmatpush3.msra.mxu1 %v117_v13  ;;  %p379_p4 = pnand %p378_p3, %p372_p0 }
  0x13   :  { %356 = vmatprep.subr.mxu1 %v393_v2 }
  0x14   :  { %357 = vmatpush3.msra.mxu1 %v116_v14 }
  0x8c   :  { %v211_v31 = vpop.permute.xlu0 %210 }
  0x8d   :  { %v216_v32 = vrot.slane %v211_v31, %v215_v30 }
  0xcc   :  { %v111_v16 = vpop.f32.mrf.mxu0 }
  0xcd   :  { %v112_v17 = vadd.f32 %v309_v15, %v111_v16 }
  0xce   :  { %v341_v18 = vpop.f32.mrf.mxu0 }
  0xcf   :  { %v115_v19 = vmax.f32 %v112_v17, 0.0 }
  0xd1   :  { %359 = vmatmul.mubr.msk.f32.vlgmr.msra.gmra.mxu1 %vm131_vm2, %v115_v19 }
 0x191   :  { %v201_v23 = vpop.f32.mrf.mxu1 }
 0x192   :  { %v202_v24 = vadd.f32 %v311_v22, %v201_v23 }
 0x193   :  { %v360_v25 = vpop.f32.mrf.mxu1 }
 0x194   :  { %v205_v26 = vmax.f32 %v202_v24, 0.0 }
 0x196   :  { %362 = vmatpush3.xpose.msk.msra.mxu0 %vm41_vm1, %v205_v26 }
 0x199   :  { %364 = vmatmul.mubr.msk.f32.vlgmr.msra.gmra.mxu0 %vm41_vm1, %v206_v27 }
 0x259   :  { %v289_v33 = vpop.f32.mrf.mxu0 }
 0x25a   :  { %v290_v34 = vadd.f32 %v289_v33, %v216_v32 }
 0x25b   :  { %v365_v35 = vpop.f32.mrf.mxu0 }
 0x25c   :  { %294 = vst.msk [vmem:[#allocation3] sm:$0x1] %vm293_vm3, %v290_v34 }
 0x25d   :  { %382 = shalt.err (!%p379_p4)
}
 0x25e   :  { %304 = dma.vmem_to_hbm [thread:$0]  %s302_s8, 16, %s504_s7, [#allocation4]  }
 0x25f   :  { %391 = dma.done.wait [#allocation4], 16  }
 0x260   :  { %392 = vsyncadd [#allocation4], 4294967280 }
 0x261   :  { %308 = vsyncpa [#allocation4], 1 }

// kernel: _mlp_pallas.1
= control target key start
LH: loop header
LB: loop body
LE: loop exit
PB: predicated region body
PF: predicated region fallthrough
CT: control target
= control target key end

     0   :  { %s497_s0 = inlined_call_operand.vmem [shape: f32[8,32], index: 0, kind: input, shape index: {}]   ;;  %s498_s1 = inlined_call_operand.vmem [shape: f32[32,64], index: 1, kind: input, shape index: {}]   ;;  %s499_s2 = inlined_call_operand.vmem [shape: f32[1,64], index: 2, kind: input, shape index: {}]   ;;  %s500_s3 = inlined_call_operand.vmem [shape: f32[64,32], index: 3, kind: input, shape index: {}]   ;;  %s501_s4 = inlined_call_operand.vmem [shape: f32[1,32], index: 4, kind: input, shape index: {}]   ;;  %s502_s5 = inlined_call_operand.vmem [shape: f32[1,32], index: 5, kind: input, shape index: {}]   ;;  %s503_s6 = inlined_call_operand.<no memory space> [shape: f32[1,1], index: 6, kind: input, shape index: {}]   ;;  %s504_s7 = inlined_call_operand.hbm [shape: f32[1,8], index: 7, kind: output, shape index: {}]  }
   0x1   :  { %v12_v0 = vstv %s503_s6 }
   0x2   :  { %13 = vst [vmem:[#allocation2] sm:$0x1] %v12_v0 }
   0x3   :  { %v33_v1 = vld [vmem:[%s498_s1 + $0x18] sm:$0xff]  ;;  %v393_v2 = vmov 0.0   ;;  %v32_v3 = vld [vmem:[%s498_s1 + $0x10] sm:$0xff]  ;;  %vm394_vm0 = vmmov 0   ;;  %v31_v6 = vld [vmem:[%s498_s1 + $0x8] sm:$0xff] }
   0x4   :  { %331 = vmatprep.subr.mxu0 %v393_v2  ;;  %339 = vmatprep.mubr.msk.f32.mxu0 %vm394_vm0, %v393_v2  ;;  %v123_v4 = vld [vmem:[%s500_s3 + $0x38] sm:$0xff]  ;;  %v122_v5 = vld [vmem:[%s500_s3 + $0x30] sm:$0xff] }
   0x5   :  { %332 = vmatpush3.msra.mxu0 %v33_v1  ;;  %342 = vmatprep.subr.mxu1 %v393_v2 }
   0x6   :  { %333 = vmatprep.subr.mxu0 %v393_v2  ;;  %343 = vmatpush3.msra.mxu1 %v123_v4 }
   0x7   :  { %14 = vsyncpa [#allocation4], 0  ;;  %334 = vmatpush3.msra.mxu0 %v32_v3  ;;  %344 = vmatprep.subr.mxu1 %v393_v2  ;;  %v121_v7 = vld [vmem:[%s500_s3 + $0x28] sm:$0xff]  ;;  %v30_v8 = vld [vmem:[%s498_s1] sm:$0xff]  ;;  %vm41_vm1 = vcmask 261120   ;;  %vm131_vm2 = vcmask 523264   ;;  %v213_v28 = vlaneseq }
   0x8   :  { %335 = vmatprep.subr.mxu0 %v393_v2  ;;  %345 = vmatpush3.msra.mxu1 %v122_v5  ;;  %v29_v9 = vld [vmem:[%s497_s0] sm:$0xff]  ;;  %v119_v11 = vld [vmem:[%s500_s3 + $0x18] sm:$0xff]  ;;  %v118_v12 = vld [vmem:[%s500_s3 + $0x10] sm:$0xff]  ;;  %v395_v21 = vmov 0   ;;  %s396_s30 = smov [#allocation3]   ;;  %vm293_vm3 = vcmask 57344  }
   0x9   :  { %336 = vmatpush3.msra.mxu0 %v31_v6  ;;  %346 = vmatprep.subr.mxu1 %v393_v2  ;;  %v120_v10 = vld [vmem:[%s500_s3 + $0x20] sm:$0xff]  ;;  %v117_v13 = vld [vmem:[%s500_s3 + $0x8] sm:$0xff]  ;;  %v214_v29 = vshrl.u32 %v213_v28, 7  ;;  %s301_s8 = sshll.u32 %s396_s30, 4  ;;  %s302_s8 = int_to_ptr.vmem [resolvable:$true] %s301_s8 }
   0xa   :  { %337 = vmatprep.subr.mxu0 %v393_v2  ;;  %347 = vmatpush3.msra.mxu1 %v121_v7  ;;  %v116_v14 = vld [vmem:[%s500_s3] sm:$0xff]  ;;  %s375_s6 = scalar_lea.vmem %s302_s8, 32  ;;  %p376_p1 = scmp.lt.s32.totalorder %s302_s8, %s302_s8 }
   0xb   :  { %338 = vmatpush3.msra.mxu0 %v30_v8  ;;  %348 = vmatprep.subr.mxu1 %v393_v2  ;;  %v309_v15 = vld [vmem:[%s499_s2] ss:$0 sm:$0xff]  ;;  %v215_v30 = vsub.s32 0, %v214_v29 }
   0xc   :  { %340 = vmatmul.mubr.msk.f32.vlgmr.msra.gmra.mxu0 %vm41_vm1, %v29_v9  ;;  %349 = vmatpush3.msra.mxu1 %v120_v10  ;;  %v207_v20 = vld [vmem:[#allocation2] sm:$0x1] }
   0xd   :  { %350 = vmatprep.subr.mxu1 %v393_v2  ;;  %358 = vmatprep.mubr.msk.f32.mxu1 %vm394_vm0, %v393_v2  ;;  %v311_v22 = vld [vmem:[%s501_s4] ss:$0 sm:$0xff]  ;;  %s371_s4 = scalar_lea.vmem %s302_s8, 16 }
   0xe   :  { %351 = vmatpush3.msra.mxu1 %v119_v11  ;;  %361 = vmatprep.subr.mxu0 %v393_v2  ;;  %v206_v27 = vld [vmem:[%s502_s5] sm:$0x1]  ;;  %p372_p0 = scmp.ne.s32.totalorder %s302_s8, %s371_s4  ;;  %p377_p2 = scmp.lt.s32.totalorder %s375_s6, %s371_s4 }
   0xf   :  { %352 = vmatprep.subr.mxu1 %v393_v2  ;;  %363 = vmatprep.mubr.msk.f32.mxu0 %vm394_vm0, %v393_v2 }
  0x10   :  { %353 = vmatpush3.msra.mxu1 %v118_v12  ;;  %370 = vset.pattern.permute.xlu0 %v395_v21  ;;  %p378_p3 = por %p377_p2, %p376_p1 }
  0x11   :  { %354 = vmatprep.subr.mxu1 %v393_v2  ;;  %210 = vperm.xlu0 %370, %v207_v20  }
  0x12   :  { %355 = vmatpush3.msra.mxu1 %v117_v13  ;;  %p379_p4 = pnand %p378_p3, %p372_p0 }
  0x13   :  { %356 = vmatprep.subr.mxu1 %v393_v2 }
  0x14   :  { %357 = vmatpush3.msra.mxu1 %v116_v14 }
  0x8c   :  { %v211_v31 = vpop.permute.xlu0 %210 }
  0x8d   :  { %v216_v32 = vrot.slane %v211_v31, %v215_v30 }
  0xcc   :  { %v111_v16 = vpop.f32.mrf.mxu0 }
  0xcd   :  { %v112_v17 = vadd.f32 %v309_v15, %v111_v16 }
  0xce   :  { %v341_v18 = vpop.f32.mrf.mxu0 }
  0xcf   :  { %v115_v19 = vmax.f32 %v112_v17, 0.0 }
  0xd1   :  { %359 = vmatmul.mubr.msk.f32.vlgmr.msra.gmra.mxu1 %vm131_vm2, %v115_v19 }
 0x191   :  { %v201_v23 = vpop.f32.mrf.mxu1 }
 0x192   :  { %v202_v24 = vadd.f32 %v311_v22, %v201_v23 }
 0x193   :  { %v360_v25 = vpop.f32.mrf.mxu1 }
 0x194   :  { %v205_v26 = vmax.f32 %v202_v24, 0.0 }
 0x196   :  { %362 = vmatpush3.xpose.msk.msra.mxu0 %vm41_vm1, %v205_v26 }
 0x199   :  { %364 = vmatmul.mubr.msk.f32.vlgmr.msra.gmra.mxu0 %vm41_vm1, %v206_v27 }
 0x259   :  { %v289_v33 = vpop.f32.mrf.mxu0 }
 0x25a   :  { %v290_v34 = vadd.f32 %v289_v33, %v216_v32 }
 0x25b   :  { %v365_v35 = vpop.f32.mrf.mxu0 }
 0x25c   :  { %294 = vst.msk [vmem:[#allocation3] sm:$0x1] %vm293_vm3, %v290_v34 }
 0x25d   :  { %382 = shalt.err (!%p379_p4)
}
 0x25e   :  { %304 = dma.vmem_to_hbm [thread:$0]  %s302_s8, 16, %s504_s7, [#allocation4]  }
 0x25f   :  { %391 = dma.done.wait [#allocation4], 16  }
 0x260   :  { %392 = vsyncadd [#allocation4], 4294967280 }
 0x261   :  { %308 = vsyncpa [#allocation4], 1 }

</bundles_post_ra>
